<compile_context>
chip_gen: v5e
topology: v5e:2x2
jax: 0.10.0
libtpu: 0.0.40
codegen_flags: <defaults>
</compile_context>

<pallas_src>
import jax
import jax.numpy as jnp
from jax import lax
from jax.experimental import pallas as pl
from jax.experimental.pallas import tpu as pltpu

HIDDEN_SIZE = 20
MARGIN = 2.0


# ----------------------------- Pallas kernel --------------------------------
def _transh_kernel(n_valid_ref, x_ref, out_ref):
    """One batch tile.

    n_valid_ref : SMEM (1,) int32 — actual (unpadded) batch size.
    x_ref       : VMEM (8, H, TB) f32 — lane-dense batch tile.
                  slices: 0=p_h 1=p_t 2=p_r 3=p_norm 4=n_h 5=n_t 6=n_r 7=n_norm
    out_ref     : VMEM (1, TB) f32 — per-sample hinge loss (0 for padded cols).
    """
    tb = out_ref.shape[1]

    def folded_score(h, t, r, w):
        # |h_proj + r - t_proj| with both hyperplane projections folded:
        #   h_proj - t_proj = (h - t) - <h - t, w> * w
        d = h - t                                        # (H, TB)
        dot = jnp.sum(d * w, axis=0, keepdims=True)      # (1, TB) sublane reduce
        return jnp.sum(jnp.abs(d - dot * w + r), axis=0, keepdims=True)  # (1, TB)

    p_score = folded_score(x_ref[0], x_ref[1], x_ref[2], x_ref[3])
    n_score = folded_score(x_ref[4], x_ref[5], x_ref[6], x_ref[7])

    # nn.MarginRankingLoss(margin, size_average=False) with y = -1:
    #   per-sample = max(0, (p_score - n_score) + margin)
    hinge = jnp.maximum(p_score - n_score + MARGIN, 0.0)  # (1, TB)

    # Zero out padded batch columns.
    col = lax.broadcasted_iota(jnp.int32, (1, tb), 1) + pl.program_id(0) * tb
    valid = col < n_valid_ref[0]
    out_ref[...] = jnp.where(valid, hinge, 0.0)


def transh_loss_pallas(stacked, n_valid, tb):
    """stacked: (8, H, B_pad) f32, B_pad % tb == 0, tb % 128 == 0."""
    n_ops, hidden, b_pad = stacked.shape
    grid = b_pad // tb
    per_sample = pl.pallas_call(
        _transh_kernel,
        out_shape=jax.ShapeDtypeStruct((1, b_pad), jnp.float32),
        grid_spec=pltpu.PrefetchScalarGridSpec(
            num_scalar_prefetch=1,
            grid=(grid,),
            in_specs=[pl.BlockSpec((n_ops, hidden, tb),
                                   lambda i, nv: (0, 0, i))],
            out_specs=pl.BlockSpec((1, tb), lambda i, nv: (0, i)),
        ),
        compiler_params=pltpu.CompilerParams(
            dimension_semantics=("parallel",)),
    )(jnp.asarray([n_valid], jnp.int32), stacked)
    # Scalar loss = sum of per-sample hinges (padded columns are exactly 0).
    return jnp.sum(per_sample)


# ----------------------------- parameter setup -------------------------------
def xavier_uniform(key, shape):
    fan_in, fan_out = shape[0], shape[1]
    bound = jnp.sqrt(6.0 / (fan_in + fan_out))
    return jax.random.uniform(key, shape, jnp.float32, -bound, bound)


def l2_normalize_rows(w, eps=1e-12):
    norm = jnp.sqrt(jnp.sum(w * w, axis=1, keepdims=True))
    return w / jnp.maximum(norm, eps)


class TransHParams:
    def __init__(self, key, ent_num, rel_num, hidden_size):
        k1, k2, k3 = jax.random.split(key, 3)
        self.ent_embedding = l2_normalize_rows(
            xavier_uniform(k1, (ent_num, hidden_size)))
        self.rel_embedding = l2_normalize_rows(
            xavier_uniform(k2, (rel_num, hidden_size)))
        self.norm_vector = l2_normalize_rows(
            xavier_uniform(k3, (rel_num, hidden_size)))


def transh_forward(params, samples):
    """samples: dict of int32 index arrays p_h, p_t, p_r, n_h, n_t, n_r (B,)."""
    # TODO(synk): fuse these embedding gathers into the kernel (scalar-prefetch
    # driven index_maps / in-kernel dynamic row gather); Mosaic's general
    # dynamic-gather support is limited, so they stay as XLA gathers for now.
    p_h = params.ent_embedding[samples["p_h"]]
    p_t = params.ent_embedding[samples["p_t"]]
    p_r = params.rel_embedding[samples["p_r"]]
    p_w = params.norm_vector[samples["p_r"]]
    n_h = params.ent_embedding[samples["n_h"]]
    n_t = params.ent_embedding[samples["n_t"]]
    n_r = params.rel_embedding[samples["n_r"]]
    n_w = params.norm_vector[samples["n_r"]]

    B, _ = p_h.shape
    tb = min(512, pl.next_power_of_2(max(B, 128)))   # lane-dense batch tile
    b_pad = pl.cdiv(B, tb) * tb

    # One slab: (8, B, H) -> (8, H, B_pad), batch on lanes, H on sublanes.
    stacked = jnp.stack([p_h, p_t, p_r, p_w, n_h, n_t, n_r, n_w], axis=0)
    stacked = jnp.transpose(stacked, (0, 2, 1))
    stacked = jnp.pad(stacked, ((0, 0), (0, 0), (0, b_pad - B)))
    return transh_loss_pallas(stacked, B, tb)


# pure-JAX reference (unfolded, mirrors the PyTorch module) for sanity check
def transh_forward_ref(params, samples):
    def transfer(e, norm):
        return e - jnp.sum(e * norm, axis=1, keepdims=True) * norm
    p_h_e = params.ent_embedding[samples["p_h"]]
    p_t_e = params.ent_embedding[samples["p_t"]]
    p_r_e = params.rel_embedding[samples["p_r"]]
    n_h_e = params.ent_embedding[samples["n_h"]]
    n_t_e = params.ent_embedding[samples["n_t"]]
    n_r_e = params.rel_embedding[samples["n_r"]]
    p_norm = params.norm_vector[samples["p_r"]]
    n_norm = params.norm_vector[samples["n_r"]]
    p_h, p_t = transfer(p_h_e, p_norm), transfer(p_t_e, p_norm)
    n_h, n_t = transfer(n_h_e, n_norm), transfer(n_t_e, n_norm)
    p_score = jnp.sum(jnp.abs(p_h + p_r_e - p_t), axis=1)
    n_score = jnp.sum(jnp.abs(n_h + n_r_e - n_t), axis=1)
    return jnp.sum(jnp.maximum(p_score - n_score + MARGIN, 0.0))


if __name__ == "__main__":
    ent_num, rel_num, batch = 50, 10, 8
    key = jax.random.PRNGKey(0)
    k_params, k_ph, k_pt, k_pr, k_nh, k_nt, k_nr = jax.random.split(key, 7)

    params = TransHParams(k_params, ent_num, rel_num, HIDDEN_SIZE)

    samples = {
        "p_h": jax.random.randint(k_ph, (batch,), 0, ent_num, jnp.int32),
        "p_t": jax.random.randint(k_pt, (batch,), 0, ent_num, jnp.int32),
        "p_r": jax.random.randint(k_pr, (batch,), 0, rel_num, jnp.int32),
        "n_h": jax.random.randint(k_nh, (batch,), 0, ent_num, jnp.int32),
        "n_t": jax.random.randint(k_nt, (batch,), 0, ent_num, jnp.int32),
        "n_r": jax.random.randint(k_nr, (batch,), 0, rel_num, jnp.int32),
    }

    loss = transh_forward(params, samples)
    jax.block_until_ready(loss)

    loss_ref = transh_forward_ref(params, samples)
    assert jnp.allclose(loss, loss_ref, rtol=1e-5, atol=1e-5), (loss, loss_ref)

    print("KERNEL_OK")
</pallas_src>

<mosaic_0001>
module attributes {stable_mosaic.version = 11 : i64} {
  func.func @_transh_kernel(%arg0: i32, %arg1: memref<1xi32, #tpu.memory_space<smem>>, %arg2: memref<8x20x128xf32, #tpu.memory_space<vmem>>, %arg3: memref<1x128xf32, #tpu.memory_space<vmem>>) attributes {dimension_semantics = [#tpu.dimension_semantics<parallel>], iteration_bounds = array<i64: 1>, scalar_prefetch = 1 : i64, scratch_operands = 0 : i64, tpu.core_type = #tpu.core_type<tc>, window_params = [{transform_indices = @transform_0, window_bounds = array<i64: 8, 20, 128>}, {transform_indices = @transform_1, window_bounds = array<i64: 1, 128>}]} {
    %c0 = arith.constant 0 : index
    %c0_0 = arith.constant 0 : index
    %c0_1 = arith.constant 0 : index
    %0 = vector.load %arg2[%c0, %c0_0, %c0_1] : memref<8x20x128xf32, #tpu.memory_space<vmem>>, vector<1x20x128xf32>
    %1 = vector.shape_cast %0 : vector<1x20x128xf32> to vector<20x128xf32>
    %c1 = arith.constant 1 : index
    %c0_2 = arith.constant 0 : index
    %c0_3 = arith.constant 0 : index
    %2 = vector.load %arg2[%c1, %c0_2, %c0_3] : memref<8x20x128xf32, #tpu.memory_space<vmem>>, vector<1x20x128xf32>
    %3 = vector.shape_cast %2 : vector<1x20x128xf32> to vector<20x128xf32>
    %c2 = arith.constant 2 : index
    %c0_4 = arith.constant 0 : index
    %c0_5 = arith.constant 0 : index
    %4 = vector.load %arg2[%c2, %c0_4, %c0_5] : memref<8x20x128xf32, #tpu.memory_space<vmem>>, vector<1x20x128xf32>
    %5 = vector.shape_cast %4 : vector<1x20x128xf32> to vector<20x128xf32>
    %c3 = arith.constant 3 : index
    %c0_6 = arith.constant 0 : index
    %c0_7 = arith.constant 0 : index
    %6 = vector.load %arg2[%c3, %c0_6, %c0_7] : memref<8x20x128xf32, #tpu.memory_space<vmem>>, vector<1x20x128xf32>
    %7 = vector.shape_cast %6 : vector<1x20x128xf32> to vector<20x128xf32>
    %8 = arith.subf %1, %3 : vector<20x128xf32>
    %9 = arith.mulf %8, %7 : vector<20x128xf32>
    %cst = arith.constant dense<0.000000e+00> : vector<128xf32>
    %10 = vector.multi_reduction <add>, %9, %cst [0] : vector<20x128xf32> to vector<128xf32>
    %11 = vector.shape_cast %10 : vector<128xf32> to vector<1x128xf32>
    %12 = vector.broadcast %11 : vector<1x128xf32> to vector<20x128xf32>
    %13 = arith.mulf %12, %7 : vector<20x128xf32>
    %14 = arith.subf %8, %13 : vector<20x128xf32>
    %15 = arith.addf %14, %5 : vector<20x128xf32>
    %16 = math.absf %15 : vector<20x128xf32>
    %cst_8 = arith.constant dense<0.000000e+00> : vector<128xf32>
    %17 = vector.multi_reduction <add>, %16, %cst_8 [0] : vector<20x128xf32> to vector<128xf32>
    %18 = vector.shape_cast %17 : vector<128xf32> to vector<1x128xf32>
    %c4 = arith.constant 4 : index
    %c0_9 = arith.constant 0 : index
    %c0_10 = arith.constant 0 : index
    %19 = vector.load %arg2[%c4, %c0_9, %c0_10] : memref<8x20x128xf32, #tpu.memory_space<vmem>>, vector<1x20x128xf32>
    %20 = vector.shape_cast %19 : vector<1x20x128xf32> to vector<20x128xf32>
    %c5 = arith.constant 5 : index
    %c0_11 = arith.constant 0 : index
    %c0_12 = arith.constant 0 : index
    %21 = vector.load %arg2[%c5, %c0_11, %c0_12] : memref<8x20x128xf32, #tpu.memory_space<vmem>>, vector<1x20x128xf32>
    %22 = vector.shape_cast %21 : vector<1x20x128xf32> to vector<20x128xf32>
    %c6 = arith.constant 6 : index
    %c0_13 = arith.constant 0 : index
    %c0_14 = arith.constant 0 : index
    %23 = vector.load %arg2[%c6, %c0_13, %c0_14] : memref<8x20x128xf32, #tpu.memory_space<vmem>>, vector<1x20x128xf32>
    %24 = vector.shape_cast %23 : vector<1x20x128xf32> to vector<20x128xf32>
    %c7 = arith.constant 7 : index
    %c0_15 = arith.constant 0 : index
    %c0_16 = arith.constant 0 : index
    %25 = vector.load %arg2[%c7, %c0_15, %c0_16] : memref<8x20x128xf32, #tpu.memory_space<vmem>>, vector<1x20x128xf32>
    %26 = vector.shape_cast %25 : vector<1x20x128xf32> to vector<20x128xf32>
    %27 = arith.subf %20, %22 : vector<20x128xf32>
    %28 = arith.mulf %27, %26 : vector<20x128xf32>
    %cst_17 = arith.constant dense<0.000000e+00> : vector<128xf32>
    %29 = vector.multi_reduction <add>, %28, %cst_17 [0] : vector<20x128xf32> to vector<128xf32>
    %30 = vector.shape_cast %29 : vector<128xf32> to vector<1x128xf32>
    %31 = vector.broadcast %30 : vector<1x128xf32> to vector<20x128xf32>
    %32 = arith.mulf %31, %26 : vector<20x128xf32>
    %33 = arith.subf %27, %32 : vector<20x128xf32>
    %34 = arith.addf %33, %24 : vector<20x128xf32>
    %35 = math.absf %34 : vector<20x128xf32>
    %cst_18 = arith.constant dense<0.000000e+00> : vector<128xf32>
    %36 = vector.multi_reduction <add>, %35, %cst_18 [0] : vector<20x128xf32> to vector<128xf32>
    %37 = vector.shape_cast %36 : vector<128xf32> to vector<1x128xf32>
    %38 = arith.subf %18, %37 : vector<1x128xf32>
    %cst_19 = arith.constant 2.000000e+00 : f32
    %39 = vector.broadcast %cst_19 : f32 to vector<1x128xf32>
    %40 = arith.addf %38, %39 : vector<1x128xf32>
    %cst_20 = arith.constant 0.000000e+00 : f32
    %41 = vector.broadcast %cst_20 : f32 to vector<1x128xf32>
    %42 = arith.maximumf %40, %41 : vector<1x128xf32>
    %43 = tpu.iota {dimensions = array<i32: 1>} : vector<1x128xi32>
    %c128_i32 = arith.constant 128 : i32
    %44 = arith.muli %arg0, %c128_i32 : i32
    %45 = vector.broadcast %44 : i32 to vector<1x128xi32>
    %46 = arith.addi %43, %45 : vector<1x128xi32>
    %c0_21 = arith.constant 0 : index
    %47 = memref.load %arg1[%c0_21] : memref<1xi32, #tpu.memory_space<smem>>
    %48 = vector.broadcast %47 : i32 to vector<1x128xi32>
    %49 = arith.cmpi slt, %46, %48 : vector<1x128xi32>
    %cst_22 = arith.constant 0.000000e+00 : f32
    %50 = vector.broadcast %cst_22 : f32 to vector<1x128xf32>
    %51 = arith.select %49, %42, %50 : vector<1x128xi1>, vector<1x128xf32>
    %c0_23 = arith.constant 0 : index
    %c0_24 = arith.constant 0 : index
    %52 = vector.load %arg3[%c0_23, %c0_24] : memref<1x128xf32, #tpu.memory_space<vmem>>, vector<1x128xf32>
    tpu.vector_store %arg3[%c0_23, %c0_24], %51 {strides = array<i32>} : memref<1x128xf32, #tpu.memory_space<vmem>>, vector<1x128xf32>,
    return
  }
  func.func @transform_0(%arg0: i32, %arg1: memref<1xi32, #tpu.memory_space<smem>>) -> (i32, i32, i32) {
    %c0_i32 = arith.constant 0 : i32
    %c0_i32_0 = arith.constant 0 : i32
    %c0_i32_1 = arith.constant 0 : i32
    return %c0_i32, %c0_i32_0, %arg0 : i32, i32, i32
  }
  func.func @transform_1(%arg0: i32, %arg1: memref<1xi32, #tpu.memory_space<smem>>) -> (i32, i32) {
    %c0_i32 = arith.constant 0 : i32
    %c0_i32_0 = arith.constant 0 : i32
    return %c0_i32, %arg0 : i32, i32
  }
}

</mosaic_0001>

<bundles_post_ra>
// kernel: tpu_custom_call.1
= control target key start
LH: loop header
LB: loop body
LE: loop exit
PB: predicated region body
PF: predicated region fallthrough
CT: control target
= control target key end

     0   :  { %vm33_vm0 = vcmask 1043456   ;;  %s290_s0 = inlined_call_operand.<no memory space> [shape: s32[1], index: 0, kind: input, shape index: {}]   ;;  %s291_s1 = inlined_call_operand.vmem [shape: f32[8,20,128], index: 1, kind: input, shape index: {}]   ;;  %s292_s2 = inlined_call_operand.hbm [shape: f32[1,128], index: 2, kind: output, shape index: {}]  }
   0x1   :  { %v11_v0 = vld [vmem:[%s291_s1] sm:$0xff]  ;;  %v12_v1 = vld [vmem:[%s291_s1 + $0x8] sm:$0xff]  ;;  %v13_v2 = vld [vmem:[%s291_s1 + $0x10] sm:$0xf] }
   0x2   :  { %v144_v3 = vld [vmem:[%s291_s1 + $0x18] sm:$0xff]  ;;  %v145_v4 = vld [vmem:[%s291_s1 + $0x20] sm:$0xff]  ;;  %v146_v5 = vld [vmem:[%s291_s1 + $0x28] sm:$0xf] }
   0x3   :  { %v26_v6 = vsub.f32 %v11_v0, %v144_v3  ;;  %v27_v7 = vsub.f32 %v12_v1, %v145_v4  ;;  %v28_v8 = vsub.f32 %v13_v2, %v146_v5  ;;  %v150_v9 = vld [vmem:[%s291_s1 + $0x48] sm:$0xff]  ;;  %v151_v10 = vld [vmem:[%s291_s1 + $0x50] sm:$0xff]  ;;  %v152_v11 = vld [vmem:[%s291_s1 + $0x58] sm:$0xf] }
   0x4   :  { %v153_v15 = vld [vmem:[%s291_s1 + $0x60] sm:$0xff]  ;;  %v154_v16 = vld [vmem:[%s291_s1 + $0x68] sm:$0xff]  ;;  %v155_v17 = vld [vmem:[%s291_s1 + $0x70] sm:$0xf] }
   0x5   :  { %v29_v12 = vmul.f32 %v150_v9, %v26_v6  ;;  %v30_v13 = vmul.f32 %v151_v10, %v27_v7  ;;  %v31_v14 = vmul.f32 %v152_v11, %v28_v8  ;;  %v156_v18 = vld [vmem:[%s291_s1 + $0x78] sm:$0xff]  ;;  %v157_v19 = vld [vmem:[%s291_s1 + $0x80] sm:$0xff]  ;;  %v158_v20 = vld [vmem:[%s291_s1 + $0x88] sm:$0xf] }
   0x6   :  { %v79_v23 = vsub.f32 %v153_v15, %v156_v18  ;;  %v80_v24 = vsub.f32 %v154_v16, %v157_v19  ;;  %v162_v25 = vld [vmem:[%s291_s1 + $0xa8] sm:$0xff]  ;;  %v163_v26 = vld [vmem:[%s291_s1 + $0xb0] sm:$0xff]  ;;  %v164_v27 = vld [vmem:[%s291_s1 + $0xb8] sm:$0xf]  ;;  %v81_v28 = vsub.f32 %v155_v17, %v158_v20 }
   0x7   :  { %v32_v21 = vadd.f32 %v30_v13, %v29_v12  ;;  %v34_v22 = vsel %vm33_vm0, %v31_v14, 0.0 }
   0x8   :  { %v82_v30 = vmul.f32 %v162_v25, %v79_v23  ;;  %v83_v31 = vmul.f32 %v163_v26, %v80_v24 }
   0x9   :  { %v35_v29 = vadd.f32 %v34_v22, %v32_v21 }
   0xa   :  { %8 = vsyncpa [#allocation5], 0  ;;  %v84_v32 = vmul.f32 %v164_v27, %v81_v28  ;;  %v85_v34 = vadd.f32 %v83_v31, %v82_v30  ;;  %v147_v50 = vld [vmem:[%s291_s1 + $0x30] sm:$0xff]  ;;  %v148_v51 = vld [vmem:[%s291_s1 + $0x38] sm:$0xff]  ;;  %s192_s30 = smov [#allocation4]   ;;  %s135_s6 = sshll.u32 %s292_s2, 4  ;;  %s136_s6 = int_to_ptr.hbm [resolvable:$true] %s135_s6 }
   0xb   :  { %v36_v33 = vrot.slane %v35_v29, 4  ;;  %v149_v52 = vld [vmem:[%s291_s1 + $0x40] sm:$0xf]  ;;  %v159_v61 = vld [vmem:[%s291_s1 + $0x90] sm:$0xff]  ;;  %v160_v62 = vld [vmem:[%s291_s1 + $0x98] sm:$0xff]  ;;  %s133_s3 = sshll.u32 %s192_s30, 4  ;;  %s134_s3 = int_to_ptr.vmem [resolvable:$true] %s133_s3 }
   0xc   :  { %v86_v35 = vsel %vm33_vm0, %v84_v32, 0.0  ;;  %v161_v63 = vld [vmem:[%s291_s1 + $0xa0] sm:$0xf] }
   0xd   :  { %v37_v36 = vadd.f32 %v36_v33, %v35_v29  ;;  %v87_v37 = vadd.f32 %v86_v35, %v85_v34  ;;  %v118_v29 = vlaneseq  ;;  %v124_v35 = vstv %s290_s0 }
   0xf   :  { %v38_v38 = vrot.slane %v37_v36, 2  ;;  %v88_v39 = vrot.slane %v87_v37, 4  ;;  %v119_v33 = vand.u32 127, %v118_v29 }
  0x11   :  { %v39_v40 = vadd.f32 %v38_v38, %v37_v36  ;;  %v89_v41 = vadd.f32 %v88_v39, %v87_v37  ;;  %vm125_vm1 = vcmp.lt.s32.totalorder %v119_v33, %v124_v35 }
  0x13   :  { %v40_v42 = vrot.slane %v39_v40, 1  ;;  %v90_v43 = vrot.slane %v89_v41, 2 }
  0x15   :  { %v41_v44 = vadd.f32 %v40_v42, %v39_v40  ;;  %v91_v45 = vadd.f32 %v90_v43, %v89_v41 }
  0x17   :  { %v42_v46 = vmul.f32 %v150_v9, %v41_v44  ;;  %v43_v47 = vmul.f32 %v151_v10, %v41_v44  ;;  %v44_v48 = vmul.f32 %v152_v11, %v41_v44  ;;  %v92_v49 = vrot.slane %v91_v45, 1 }
  0x19   :  { %v45_v53 = vsub.f32 %v26_v6, %v42_v46  ;;  %v46_v54 = vsub.f32 %v27_v7, %v43_v47  ;;  %v47_v55 = vsub.f32 %v28_v8, %v44_v48  ;;  %v93_v56 = vadd.f32 %v92_v49, %v91_v45 }
  0x1b   :  { %v48_v57 = vadd.f32 %v147_v50, %v45_v53  ;;  %v49_v58 = vadd.f32 %v148_v51, %v46_v54  ;;  %v50_v59 = vadd.f32 %v149_v52, %v47_v55  ;;  %v94_v60 = vmul.f32 %v162_v25, %v93_v56 }
  0x1c   :  { %v95_v0 = vmul.f32 %v163_v26, %v93_v56  ;;  %v96_v1 = vmul.f32 %v164_v27, %v93_v56 }
  0x1d   :  { %v51_v2 = vand.u32 2147483647, %v48_v57  ;;  %v52_v3 = vand.u32 2147483647, %v49_v58  ;;  %v53_v4 = vand.u32 2147483647, %v50_v59  ;;  %v97_v5 = vsub.f32 %v79_v23, %v94_v60 }
  0x1e   :  { %v98_v6 = vsub.f32 %v80_v24, %v95_v0  ;;  %v99_v7 = vsub.f32 %v81_v28, %v96_v1 }
  0x1f   :  { %v54_v8 = vadd.f32 %v52_v3, %v51_v2  ;;  %v55_v9 = vsel %vm33_vm0, %v53_v4, 0.0  ;;  %v100_v10 = vadd.f32 %v159_v61, %v97_v5 }
  0x20   :  { %v101_v11 = vadd.f32 %v160_v62, %v98_v6  ;;  %v102_v12 = vadd.f32 %v161_v63, %v99_v7 }
  0x21   :  { %v56_v13 = vadd.f32 %v55_v9, %v54_v8  ;;  %v103_v14 = vand.u32 2147483647, %v100_v10 }
  0x22   :  { %v104_v15 = vand.u32 2147483647, %v101_v11  ;;  %v105_v16 = vand.u32 2147483647, %v102_v12 }
  0x23   :  { %v57_v17 = vrot.slane %v56_v13, 4 }
  0x24   :  { %v106_v18 = vadd.f32 %v104_v15, %v103_v14  ;;  %v107_v19 = vsel %vm33_vm0, %v105_v16, 0.0 }
  0x25   :  { %v58_v20 = vadd.f32 %v57_v17, %v56_v13 }
  0x26   :  { %v108_v21 = vadd.f32 %v107_v19, %v106_v18 }
  0x27   :  { %v59_v22 = vrot.slane %v58_v20, 2 }
  0x28   :  { %v109_v23 = vrot.slane %v108_v21, 4 }
  0x29   :  { %v60_v24 = vadd.f32 %v59_v22, %v58_v20 }
  0x2a   :  { %v110_v25 = vadd.f32 %v109_v23, %v108_v21 }
  0x2b   :  { %v61_v26 = vrot.slane %v60_v24, 1 }
  0x2c   :  { %v111_v27 = vrot.slane %v110_v25, 2 }
  0x2d   :  { %v62_v30 = vadd.f32 %v61_v26, %v60_v24 }
  0x2e   :  { %v112_v28 = vadd.f32 %v111_v27, %v110_v25 }
  0x30   :  { %v113_v31 = vrot.slane %v112_v28, 1 }
  0x32   :  { %v114_v32 = vadd.f32 %v113_v31, %v112_v28 }
  0x34   :  { %v115_v34 = vsub.f32 %v62_v30, %v114_v32 }
  0x36   :  { %v116_v36 = vadd.f32 2.0, %v115_v34 }
  0x38   :  { %v117_v37 = vmax.f32 %v116_v36, 0.0 }
  0x3a   :  { %v126_v38 = vsel %vm125_vm1, %v117_v37, 0.0 }
  0x3b   :  { %127 = vst [vmem:[#allocation4] sm:$0x1] %v126_v38 }
  0x3c   :  { %138 = dma.vmem_to_hbm [thread:$0]  %s134_s3, 16, %s136_s6, [#allocation5]  }
  0x3d   :  { %190 = dma.done.wait [#allocation5], 16  }
  0x3e   :  { %191 = vsyncadd [#allocation5], 4294967280 }
  0x3f   :  { %143 = vsyncpa [#allocation5], 1 }

</bundles_post_ra>
